<compile_context>
chip_gen: v7x
topology: tpu7x:2x2x1
jax: 0.10.0
libtpu: 0.0.40
codegen_flags: <defaults>
</compile_context>

<pallas_src>
import functools

import jax
import jax.numpy as jnp
from jax.experimental import pallas as pl
from jax.experimental.pallas import tpu as pltpu

EPS = 1e-5  # PyTorch BatchNorm1d default eps


def _round_up(x, m):
    return ((x + m - 1) // m) * m


def _pad_to(a, shape, dtype):
    a = a.astype(dtype)
    if tuple(a.shape) == tuple(shape):
        return a
    pads = [(0, s - d) for d, s in zip(a.shape, shape)]
    return jnp.pad(a, pads)


def _choose_tile_n(n_rows, dp, budget_bytes=40 << 20):
    """Largest row tile (multiple of 8) whose double-buffered x (bf16) + out (f32)
    blocks, plus the resident (Dp, Dp) weight, fit the VMEM budget."""
    n_aligned = _round_up(max(n_rows, 8), 8)
    per_row = dp * (2 * 2 + 2 * 4)            # 2 x bufs (bf16) + 2 out bufs (f32)
    weight_bytes = 2 * dp * dp * 2            # double-buffered bf16 weight slots
    avail = budget_bytes - weight_bytes - (64 << 10)
    tile = max(8, (avail // per_row) // 8 * 8)
    return int(min(tile, n_aligned))


def v_package_kernel(x_ref, w_ref, g_ref, beta_ref, o_ref,
                     sum_ref, sumsq_ref, scale_ref, shift_ref,
                     *, n_real, n_tiles, tile_n):
    p = pl.program_id(0)   # phase: 0 = batch-stats pass, 1 = normalize pass
    i = pl.program_id(1)   # N-tile index

    # z = x @ W^T on the MXU (bf16 inputs, f32 accumulation).  W is kept in
    # PyTorch (D_out, D_in) layout and contracted on dim 1 of both operands.
    # The Linear bias is omitted: BN's batch-mean subtraction cancels it exactly.
    z = jax.lax.dot_general(
        x_ref[...], w_ref[...],
        dimension_numbers=(((1,), (1,)), ((), ())),
        preferred_element_type=jnp.float32)           # (tile_n, Dp) f32

    @pl.when(jnp.logical_and(p == 0, i == 0))
    def _init():
        sum_ref[...] = jnp.zeros_like(sum_ref)
        sumsq_ref[...] = jnp.zeros_like(sumsq_ref)

    @pl.when(p == 0)
    def _accumulate():
        if n_real < n_tiles * tile_n:   # static: rows were padded -> mask them out
            row = jax.lax.broadcasted_iota(jnp.int32, (tile_n, 1), 0) + i * tile_n
            zs = jnp.where(row < n_real, z, 0.0)
        else:
            zs = z
        sum_ref[...] += jnp.sum(zs, axis=0, keepdims=True)
        sumsq_ref[...] += jnp.sum(zs * zs, axis=0, keepdims=True)

    @pl.when(jnp.logical_and(p == 0, i == n_tiles - 1))
    def _finalize_stats():
        inv_n = jnp.float32(1.0 / n_real)
        mean = sum_ref[...] * inv_n
        var = sumsq_ref[...] * inv_n - mean * mean    # biased var (PyTorch training BN)
        inv_std = jax.lax.rsqrt(var + EPS)
        scale = g_ref[...] * inv_std
        scale_ref[...] = scale
        shift_ref[...] = beta_ref[...] - mean * scale

    @pl.when(p == 1)
    def _normalize():
        # Precomputed per-column scale/shift -> one mul + one add per element.
        o_ref[...] = (z * scale_ref[...] + shift_ref[...]).astype(o_ref.dtype)


def v_package_forward(x, w, b, gamma, beta, *, operation=None,
                      tile_n=None, mxu_dtype=jnp.bfloat16):
    """Fused `operation -> Linear(D, D) -> BatchNorm1d(D)` forward (training stats).

    x: (N, D) node features; w: (D_out=D, D_in=D) PyTorch Linear weight;
    b / gamma / beta: (D,).  The Linear bias `b` has no effect on the module
    output (training-mode BN subtracts the batch mean), so it is folded away.
    """
    if operation is not None:
        # TODO(synk): `operation` is a pluggable graph op in the original module;
        # applied here as a plain JAX fn (identity / V_I in the demo).
        x = operation(x)
    del b  # exactly cancelled by BatchNorm's mean subtraction

    N, D = x.shape
    Dp = _round_up(D, 128)                          # lane-dense feature dim
    if tile_n is None:
        tile_n = _choose_tile_n(N, Dp)
    tile_n = max(8, _round_up(min(tile_n, _round_up(N, 8)), 8))
    Np = _round_up(N, tile_n)
    n_tiles = Np // tile_n

    xp = _pad_to(x, (Np, Dp), mxu_dtype)            # bf16 MXU inputs
    wp = _pad_to(w, (Dp, Dp), mxu_dtype)
    gp = _pad_to(gamma.reshape(1, D), (1, Dp), jnp.float32)   # padded gamma = 0
    bep = _pad_to(beta.reshape(1, D), (1, Dp), jnp.float32)   # padded beta  = 0

    kernel = functools.partial(v_package_kernel,
                               n_real=N, n_tiles=n_tiles, tile_n=tile_n)

    flops = 2 * (2 * Np * Dp * Dp)                  # matmul runs in both phases
    bytes_accessed = (2 * xp.size * xp.dtype.itemsize        # x streamed (<=) twice
                      + wp.size * wp.dtype.itemsize
                      + Np * Dp * 4                          # output written once
                      + 2 * Dp * 4)

    out = pl.pallas_call(
        kernel,
        out_shape=jax.ShapeDtypeStruct((Np, Dp), jnp.float32),
        grid_spec=pltpu.PrefetchScalarGridSpec(
            num_scalar_prefetch=0,
            grid=(2, n_tiles),                      # (phase, N-tile)
            in_specs=[
                pl.BlockSpec((tile_n, Dp), lambda p, i: (i, 0)),   # x tiles
                pl.BlockSpec((Dp, Dp), lambda p, i: (0, 0)),       # weight (resident)
                pl.BlockSpec((1, Dp), lambda p, i: (0, 0)),        # gamma
                pl.BlockSpec((1, Dp), lambda p, i: (0, 0)),        # beta
            ],
            # p*i pins the output block during phase 0 -> no writeback traffic
            # until the normalize pass actually produces data.
            out_specs=pl.BlockSpec((tile_n, Dp), lambda p, i: (p * i, 0)),
            scratch_shapes=[pltpu.VMEM((1, Dp), jnp.float32)] * 4,  # sum, sumsq, scale, shift
        ),
        compiler_params=pltpu.CompilerParams(
            # Both axes carry state (phase ordering + running column sums).
            # TODO(synk): on v7x, make the N-tile axis "parallel" across the 2 TCs
            # with a cross-core combine of the sum/sumsq partials.
            dimension_semantics=("arbitrary", "arbitrary"),
            vmem_limit_bytes=64 * 1024 * 1024),
        cost_estimate=pl.CostEstimate(flops=flops, transcendentals=Dp,
                                      bytes_accessed=bytes_accessed),
    )(xp, wp, gp, bep)

    return out[:N, :D]


def v_package_reference(x, w, b, gamma, beta, mxu_dtype=jnp.bfloat16):
    """Plain-JAX reference mirroring the PyTorch forward (training-mode BN).
    Matmul inputs are cast to the same MXU dtype as the kernel."""
    xc = x.astype(mxu_dtype).astype(jnp.float32)
    wc = w.astype(mxu_dtype).astype(jnp.float32)
    y = xc @ wc.T + b
    mean = jnp.mean(y, axis=0, keepdims=True)
    var = jnp.mean((y - mean) ** 2, axis=0, keepdims=True)
    return (y - mean) / jnp.sqrt(var + EPS) * gamma + beta


if __name__ == "__main__":
    # 512 graph nodes, node_dim = 128 (lane-dense feature dim).
    N, D = 512, 128

    key = jax.random.PRNGKey(0)
    kx, kw, kb, kg, kbe = jax.random.split(key, 5)

    x = jax.random.normal(kx, (N, D), dtype=jnp.float32)
    bound = 1.0 / (D ** 0.5)
    w = jax.random.uniform(kw, (D, D), minval=-bound, maxval=bound, dtype=jnp.float32)
    b = jax.random.uniform(kb, (D,), minval=-bound, maxval=bound, dtype=jnp.float32)
    gamma = jnp.ones((D,), jnp.float32) + 0.1 * jax.random.normal(kg, (D,), dtype=jnp.float32)
    beta = 0.1 * jax.random.normal(kbe, (D,), dtype=jnp.float32)

    out = v_package_forward(x, w, b, gamma, beta)
    out = jax.block_until_ready(out)

    ref = v_package_reference(x, w, b, gamma, beta)
    assert out.shape == (N, D)
    assert jnp.allclose(out, ref, atol=1e-3, rtol=1e-3), "mismatch vs reference"

    print("KERNEL_OK")
</pallas_src>

<mosaic_0001>
module attributes {stable_mosaic.version = 11 : i64} {
  func.func @v_package_kernel(%arg0: i32, %arg1: i32, %arg2: memref<512x128xbf16, #tpu.memory_space<vmem>>, %arg3: memref<128x128xbf16, #tpu.memory_space<vmem>>, %arg4: memref<1x128xf32, #tpu.memory_space<vmem>>, %arg5: memref<1x128xf32, #tpu.memory_space<vmem>>, %arg6: memref<512x128xf32, #tpu.memory_space<vmem>>, %arg7: memref<1x128xf32, #tpu.memory_space<vmem>>, %arg8: memref<1x128xf32, #tpu.memory_space<vmem>>, %arg9: memref<1x128xf32, #tpu.memory_space<vmem>>, %arg10: memref<1x128xf32, #tpu.memory_space<vmem>>) attributes {dimension_semantics = [#tpu.dimension_semantics<arbitrary>, #tpu.dimension_semantics<arbitrary>], iteration_bounds = array<i64: 2, 1>, scalar_prefetch = 0 : i64, scratch_operands = 4 : i64, tpu.core_type = #tpu.core_type<tc>, window_params = [{transform_indices = @transform_0, window_bounds = array<i64: 512, 128>}, {pipeline_mode = #tpu.pipeline_mode<synchronous>, transform_indices = @transform_1, window_bounds = array<i64: 128, 128>}, {pipeline_mode = #tpu.pipeline_mode<synchronous>, transform_indices = @transform_2, window_bounds = array<i64: 1, 128>}, {pipeline_mode = #tpu.pipeline_mode<synchronous>, transform_indices = @transform_3, window_bounds = array<i64: 1, 128>}, {transform_indices = @transform_4, window_bounds = array<i64: 512, 128>}]} {
    %c0 = arith.constant 0 : index
    %c0_0 = arith.constant 0 : index
    %0 = vector.load %arg2[%c0, %c0_0] : memref<512x128xbf16, #tpu.memory_space<vmem>>, vector<512x128xbf16>
    %c0_1 = arith.constant 0 : index
    %c0_2 = arith.constant 0 : index
    %1 = vector.load %arg3[%c0_1, %c0_2] : memref<128x128xbf16, #tpu.memory_space<vmem>>, vector<128x128xbf16>
    %cst = arith.constant dense<0.000000e+00> : vector<512x128xf32>
    %2 = tpu.matmul %0, %1, %cst {dimension_numbers = #tpu.dot_dimension_numbers<[1], [1], [0], [0], [0, 0, 1, 0], [], []>} : vector<512x128xbf16>, vector<128x128xbf16>, vector<512x128xf32> -> vector<512x128xf32>
    %c0_i32 = arith.constant 0 : i32
    %3 = arith.cmpi eq, %arg0, %c0_i32 : i32
    %c0_i32_3 = arith.constant 0 : i32
    %4 = arith.cmpi eq, %arg1, %c0_i32_3 : i32
    %5 = arith.andi %3, %4 : i1
    %6 = arith.extui %5 : i1 to i32
    %c0_i32_4 = arith.constant 0 : i32
    %7 = arith.cmpi ne, %6, %c0_i32_4 : i32
    scf.if %7 {
      %cst_11 = arith.constant 0.000000e+00 : f32
      %19 = vector.broadcast %cst_11 : f32 to vector<1x128xf32>
      %c0_12 = arith.constant 0 : index
      %c0_13 = arith.constant 0 : index
      %20 = vector.load %arg7[%c0_12, %c0_13] : memref<1x128xf32, #tpu.memory_space<vmem>>, vector<1x128xf32>
      tpu.vector_store %arg7[%c0_12, %c0_13], %19 {strides = array<i32>} : memref<1x128xf32, #tpu.memory_space<vmem>>, vector<1x128xf32>,
      %cst_14 = arith.constant 0.000000e+00 : f32
      %21 = vector.broadcast %cst_14 : f32 to vector<1x128xf32>
      %c0_15 = arith.constant 0 : index
      %c0_16 = arith.constant 0 : index
      %22 = vector.load %arg8[%c0_15, %c0_16] : memref<1x128xf32, #tpu.memory_space<vmem>>, vector<1x128xf32>
      tpu.vector_store %arg8[%c0_15, %c0_16], %21 {strides = array<i32>} : memref<1x128xf32, #tpu.memory_space<vmem>>, vector<1x128xf32>,
    } else {
    }
    %c0_i32_5 = arith.constant 0 : i32
    %8 = arith.cmpi eq, %arg0, %c0_i32_5 : i32
    %9 = arith.extui %8 : i1 to i32
    %c0_i32_6 = arith.constant 0 : i32
    %10 = arith.cmpi ne, %9, %c0_i32_6 : i32
    scf.if %10 {
      %c0_11 = arith.constant 0 : index
      %c0_12 = arith.constant 0 : index
      %19 = vector.load %arg7[%c0_11, %c0_12] : memref<1x128xf32, #tpu.memory_space<vmem>>, vector<1x128xf32>
      %cst_13 = arith.constant dense<0.000000e+00> : vector<128xf32>
      %20 = vector.multi_reduction <add>, %2, %cst_13 [0] : vector<512x128xf32> to vector<128xf32>
      %21 = vector.shape_cast %20 : vector<128xf32> to vector<1x128xf32>
      %22 = arith.addf %19, %21 : vector<1x128xf32>
      %c0_14 = arith.constant 0 : index
      %c0_15 = arith.constant 0 : index
      %23 = vector.load %arg7[%c0_14, %c0_15] : memref<1x128xf32, #tpu.memory_space<vmem>>, vector<1x128xf32>
      tpu.vector_store %arg7[%c0_14, %c0_15], %22 {strides = array<i32>} : memref<1x128xf32, #tpu.memory_space<vmem>>, vector<1x128xf32>,
      %c0_16 = arith.constant 0 : index
      %c0_17 = arith.constant 0 : index
      %24 = vector.load %arg8[%c0_16, %c0_17] : memref<1x128xf32, #tpu.memory_space<vmem>>, vector<1x128xf32>
      %25 = arith.mulf %2, %2 : vector<512x128xf32>
      %cst_18 = arith.constant dense<0.000000e+00> : vector<128xf32>
      %26 = vector.multi_reduction <add>, %25, %cst_18 [0] : vector<512x128xf32> to vector<128xf32>
      %27 = vector.shape_cast %26 : vector<128xf32> to vector<1x128xf32>
      %28 = arith.addf %24, %27 : vector<1x128xf32>
      %c0_19 = arith.constant 0 : index
      %c0_20 = arith.constant 0 : index
      %29 = vector.load %arg8[%c0_19, %c0_20] : memref<1x128xf32, #tpu.memory_space<vmem>>, vector<1x128xf32>
      tpu.vector_store %arg8[%c0_19, %c0_20], %28 {strides = array<i32>} : memref<1x128xf32, #tpu.memory_space<vmem>>, vector<1x128xf32>,
    } else {
    }
    %c0_i32_7 = arith.constant 0 : i32
    %11 = arith.cmpi eq, %arg0, %c0_i32_7 : i32
    %c0_i32_8 = arith.constant 0 : i32
    %12 = arith.cmpi eq, %arg1, %c0_i32_8 : i32
    %13 = arith.andi %11, %12 : i1
    %14 = arith.extui %13 : i1 to i32
    %c0_i32_9 = arith.constant 0 : i32
    %15 = arith.cmpi ne, %14, %c0_i32_9 : i32
    scf.if %15 {
      %c0_11 = arith.constant 0 : index
      %c0_12 = arith.constant 0 : index
      %19 = vector.load %arg7[%c0_11, %c0_12] : memref<1x128xf32, #tpu.memory_space<vmem>>, vector<1x128xf32>
      %cst_13 = arith.constant 0.001953125 : f32
      %20 = vector.broadcast %cst_13 : f32 to vector<1x128xf32>
      %21 = arith.mulf %19, %20 : vector<1x128xf32>
      %c0_14 = arith.constant 0 : index
      %c0_15 = arith.constant 0 : index
      %22 = vector.load %arg8[%c0_14, %c0_15] : memref<1x128xf32, #tpu.memory_space<vmem>>, vector<1x128xf32>
      %cst_16 = arith.constant 0.001953125 : f32
      %23 = vector.broadcast %cst_16 : f32 to vector<1x128xf32>
      %24 = arith.mulf %22, %23 : vector<1x128xf32>
      %25 = arith.mulf %21, %21 : vector<1x128xf32>
      %26 = arith.subf %24, %25 : vector<1x128xf32>
      %cst_17 = arith.constant 9.99999974E-6 : f32
      %27 = vector.broadcast %cst_17 : f32 to vector<1x128xf32>
      %28 = arith.addf %26, %27 : vector<1x128xf32>
      %29 = math.rsqrt %28 : vector<1x128xf32>
      %c0_18 = arith.constant 0 : index
      %c0_19 = arith.constant 0 : index
      %30 = vector.load %arg4[%c0_18, %c0_19] : memref<1x128xf32, #tpu.memory_space<vmem>>, vector<1x128xf32>
      %31 = arith.mulf %30, %29 : vector<1x128xf32>
      %c0_20 = arith.constant 0 : index
      %c0_21 = arith.constant 0 : index
      %32 = vector.load %arg9[%c0_20, %c0_21] : memref<1x128xf32, #tpu.memory_space<vmem>>, vector<1x128xf32>
      tpu.vector_store %arg9[%c0_20, %c0_21], %31 {strides = array<i32>} : memref<1x128xf32, #tpu.memory_space<vmem>>, vector<1x128xf32>,
      %c0_22 = arith.constant 0 : index
      %c0_23 = arith.constant 0 : index
      %33 = vector.load %arg5[%c0_22, %c0_23] : memref<1x128xf32, #tpu.memory_space<vmem>>, vector<1x128xf32>
      %34 = arith.mulf %21, %31 : vector<1x128xf32>
      %35 = arith.subf %33, %34 : vector<1x128xf32>
      %c0_24 = arith.constant 0 : index
      %c0_25 = arith.constant 0 : index
      %36 = vector.load %arg10[%c0_24, %c0_25] : memref<1x128xf32, #tpu.memory_space<vmem>>, vector<1x128xf32>
      tpu.vector_store %arg10[%c0_24, %c0_25], %35 {strides = array<i32>} : memref<1x128xf32, #tpu.memory_space<vmem>>, vector<1x128xf32>,
    } else {
    }
    %c1_i32 = arith.constant 1 : i32
    %16 = arith.cmpi eq, %arg0, %c1_i32 : i32
    %17 = arith.extui %16 : i1 to i32
    %c0_i32_10 = arith.constant 0 : i32
    %18 = arith.cmpi ne, %17, %c0_i32_10 : i32
    scf.if %18 {
      %c0_11 = arith.constant 0 : index
      %c0_12 = arith.constant 0 : index
      %19 = vector.load %arg9[%c0_11, %c0_12] : memref<1x128xf32, #tpu.memory_space<vmem>>, vector<1x128xf32>
      %20 = vector.broadcast %19 : vector<1x128xf32> to vector<512x128xf32>
      %21 = arith.mulf %2, %20 : vector<512x128xf32>
      %c0_13 = arith.constant 0 : index
      %c0_14 = arith.constant 0 : index
      %22 = vector.load %arg10[%c0_13, %c0_14] : memref<1x128xf32, #tpu.memory_space<vmem>>, vector<1x128xf32>
      %23 = vector.broadcast %22 : vector<1x128xf32> to vector<512x128xf32>
      %24 = arith.addf %21, %23 : vector<512x128xf32>
      %c0_15 = arith.constant 0 : index
      %c0_16 = arith.constant 0 : index
      %25 = vector.load %arg6[%c0_15, %c0_16] : memref<512x128xf32, #tpu.memory_space<vmem>>, vector<512x128xf32>
      tpu.vector_store %arg6[%c0_15, %c0_16], %24 {strides = array<i32>} : memref<512x128xf32, #tpu.memory_space<vmem>>, vector<512x128xf32>,
    } else {
    }
    return
  }
  func.func @transform_0(%arg0: i32, %arg1: i32) -> (i32, i32) {
    %c0_i32 = arith.constant 0 : i32
    %c0_i32_0 = arith.constant 0 : i32
    return %arg1, %c0_i32 : i32, i32
  }
  func.func @transform_1(%arg0: i32, %arg1: i32) -> (i32, i32) {
    %c0_i32 = arith.constant 0 : i32
    %c0_i32_0 = arith.constant 0 : i32
    %c0_i32_1 = arith.constant 0 : i32
    return %c0_i32, %c0_i32_0 : i32, i32
  }
  func.func @transform_2(%arg0: i32, %arg1: i32) -> (i32, i32) {
    %c0_i32 = arith.constant 0 : i32
    %c0_i32_0 = arith.constant 0 : i32
    %c0_i32_1 = arith.constant 0 : i32
    return %c0_i32, %c0_i32_0 : i32, i32
  }
  func.func @transform_3(%arg0: i32, %arg1: i32) -> (i32, i32) {
    %c0_i32 = arith.constant 0 : i32
    %c0_i32_0 = arith.constant 0 : i32
    %c0_i32_1 = arith.constant 0 : i32
    return %c0_i32, %c0_i32_0 : i32, i32
  }
  func.func @transform_4(%arg0: i32, %arg1: i32) -> (i32, i32) {
    %0 = arith.muli %arg0, %arg1 : i32
    %c0_i32 = arith.constant 0 : i32
    %c0_i32_0 = arith.constant 0 : i32
    return %0, %c0_i32 : i32, i32
  }
}

</mosaic_0001>

<bundles_post_ra>
// kernel: tpu_custom_call.1
= control target key start
LH: loop header
LB: loop body
LE: loop exit
PB: predicated region body
PF: predicated region fallthrough
CT: control target
= control target key end

     0   :  { %9 = vsyncpa [#allocation7], 0  ;;  %s2660_s0 = inlined_call_operand.hbm [shape: bf16[512,128], index: 0, kind: input, shape index: {}]   ;;  %s2661_s1 = inlined_call_operand.hbm [shape: bf16[128,128], index: 1, kind: input, shape index: {}]   ;;  %s2662_s2 = inlined_call_operand.hbm [shape: f32[1,128], index: 2, kind: input, shape index: {}]   ;;  %s2663_s3 = inlined_call_operand.hbm [shape: f32[1,128], index: 3, kind: input, shape index: {}]   ;;  %s2664_s4 = inlined_call_operand.hbm [shape: f32[512,128], index: 4, kind: output, shape index: {}]  }
   0x1   :  { %10 = vsyncpa [#allocation10], 0 }
   0x2   :  { %11 = vsyncpa [#allocation13], 0 }
   0x3   :  { %12 = vsyncpa [#allocation8], 0 }
   0x4   :  { %14 = vsyncpa [#allocation8 + $0x1], 0  ;;  %s1963_s15 = smov 0   ;;  %s1965_s16 = smov 0  }
   0x5   :  { %s1967_s17 = smov 0  }
   0x6 LB: > { %s1428_s18 = sadd.s32 4294967295, %s1926_s17   ;;  %s1429_s19 = sadd.s32 4294967294, %s1926_s17   ;;  %s1926_s17 = sphi %s1967_s17, %s20_s17   ;;  %s1922_s16 = sphi %s1965_s16, %s2768_s16   ;;  %s1918_s15 = sphi %s1963_s15, %s2767_s15  }
   0x7   : > { %p1430_p0 = scmp.ge.s32.totalorder %s1926_s17, 1  ;;  %p154_p1 = scmp.lt.s32.totalorder %s1926_s17, 3 }
   0x8   : > { %p1984_p2 = scmp.eq.s32.totalorder %s1428_s18, 0  ;;  %s1928_s22 = smov [#allocation9]  }
   0x9   : > { %p1988_p3 = pnand %p1430_p0, %p154_p1  ;;  %s182_s23 = sshll.u32 %s1928_s22, 4  ;;  %s183_s23 = int_to_ptr.vmem [resolvable:$true] %s182_s23 }
   0xa   : > { %s2694_s20 = scalar_select %p1984_p2, 1, 0 }
   0xb   : > { %s2695_s21 = scalar_select %p1988_p3, 1, 0 }
   0xc   : > { %p1646_p4 = pneg %p1988_p3  ;;  %s32_s25 = sadd.s32 1, %s1922_s16 }
   0xd   : > { %p2001_p6 = scmp.ge.s32.totalorder %s32_s25, 2  ;;  %s1750_s29 = scalar_lea.hbm %s2661_s1, 1024 }
   0xe   : > { %p1996_p5 = pnand %p1984_p2, %p1646_p4  ;;  %p1751_p7 = scmp.ne.s32.totalorder %s2661_s1, %s1750_s29 }
   0xf   : > { %s2697_s26 = scalar_select %p2001_p6, 1, 0 }
  0x10   : > { %p2013_p8 = pneg %p1996_p5  ;;  %p1757_p11 = scmp.lt.u32.totalorder %s1750_s29, %s2661_s1 }
  0x12   : > { %p1753_p9 = pnand %p2013_p8, %p1751_p7 }
  0x14   : > { %p1754_p10 = pneg %p1753_p9 }
  0x16   : > { %p1759_p12 = pnand %p1757_p11, %p1754_p10 }
  0x18   : > { %1762 = shalt.err (!%p1759_p12)
}
  0x19   : > { %s1763_s9 = scalar_lea.vmem %s183_s23, 1024  ;;  %p1771_p4 = scmp.lt.s32.totalorder %s183_s23, %s183_s23 }
  0x1a   : > { %p1764_p13 = scmp.ne.s32.totalorder %s183_s23, %s1763_s9  ;;  %p1772_p2 = scmp.lt.s32.totalorder %s1763_s9, %s1763_s9 }
  0x1c   : > { %p1766_p0 = pnand %p1764_p13, %p2013_p8  ;;  %p1773_p3 = por %p1772_p2, %p1771_p4 }
  0x1e   : > { %p1767_p1 = pneg %p1766_p0 }
  0x20   : > { %p1774_p6 = pnand %p1773_p3, %p1767_p1 }
  0x22   : > { %1777 = shalt.err (!%p1774_p6)
}
  0x23   : > { %s1929_s10 = smov 64   ;;  %s1930_s11 = smov 4  }
  0x24   : > { %1652 = dma.hbm_to_vmem [thread:$0]  (!%p1996_p5), %s2661_s1, 1024, %s183_s23, [#allocation10], %s1929_s10, %s1929_s10, %s1930_s11  }
  0x25   : > { %p2699_p7 = scmp.ne.s32.totalorder %s2697_s26, 0  ;;  %s1931_s14 = smov [#allocation6]  }
  0x26   : > { %s169_s22 = sshll.u32 %s1931_s14, 4  ;;  %s1932_s27 = smov [#allocation11]   ;;  %s170_s22 = int_to_ptr.vmem [resolvable:$true] %s169_s22 }
  0x27   : > { %s2770_s25 = smov (%p2699_p7, %s32_s25), 0  ;;  %s196_s28 = sshll.u32 %s1932_s27, 4  ;;  %s197_s28 = int_to_ptr.vmem [resolvable:$true] %s196_s28 }
  0x28   : > { %s1778_s5 = scalar_lea.hbm %s2660_s0, 4096 }
  0x29   : > { %p1779_p2 = scmp.ne.s32.totalorder %s2660_s0, %s1778_s5  ;;  %p1785_p9 = scmp.lt.u32.totalorder %s1778_s5, %s2660_s0 }
  0x2b   : > { %p1781_p3 = pnand %p1779_p2, %p2013_p8 }
  0x2d   : > { %p1782_p6 = pneg %p1781_p3 }
  0x2f   : > { %p1787_p10 = pnand %p1785_p9, %p1782_p6 }
  0x31   : > { %1790 = shalt.err (!%p1787_p10)
}
  0x32   : > { %s1791_s9 = scalar_lea.vmem %s170_s22, 4096  ;;  %p1799_p0 = scmp.lt.s32.totalorder %s170_s22, %s170_s22 }
  0x33   : > { %p1792_p11 = scmp.ne.s32.totalorder %s170_s22, %s1791_s9  ;;  %p1800_p1 = scmp.lt.s32.totalorder %s1791_s9, %s1791_s9 }
  0x35   : > { %p1794_p12 = pnand %p1792_p11, %p2013_p8  ;;  %p1801_p4 = por %p1800_p1, %p1799_p0 }
  0x37   : > { %p1795_p13 = pneg %p1794_p12 }
  0x39   : > { %p1802_p7 = pnand %p1801_p4, %p1795_p13 }
  0x3b   : > { %1805 = shalt.err (!%p1802_p7)
}
  0x3c   : > { %1649 = dma.hbm_to_vmem [thread:$0]  (!%p1996_p5), %s2660_s0, 4096, %s170_s22, [#allocation7], %s1929_s10, %s1929_s10, %s1930_s11  }
  0x3d   : > { %s1806_s29 = scalar_lea.hbm %s2662_s2, 16 }
  0x3e   : > { %p1807_p2 = scmp.ne.s32.totalorder %s2662_s2, %s1806_s29  ;;  %p1813_p9 = scmp.lt.u32.totalorder %s1806_s29, %s2662_s2 }
  0x40   : > { %p1809_p3 = pnand %p1807_p2, %p2013_p8 }
  0x42   : > { %p1810_p6 = pneg %p1809_p3 }
  0x44   : > { %p1815_p10 = pnand %p1813_p9, %p1810_p6 }
  0x46   : > { %1818 = shalt.err (!%p1815_p10)
}
  0x47   : > { %s1819_s23 = scalar_lea.vmem %s197_s28, 16  ;;  %s1826_s10 = scalar_lea.vmem %s197_s28, 32 }
  0x48   : > { %p1820_p11 = scmp.ne.s32.totalorder %s197_s28, %s1819_s23  ;;  %p1827_p0 = scmp.lt.s32.totalorder %s197_s28, %s197_s28 }
  0x49   : > { %p1828_p1 = scmp.lt.s32.totalorder %s1826_s10, %s1819_s23 }
  0x4a   : > { %p1822_p12 = pnand %p1820_p11, %p2013_p8 }
  0x4b   : > { %p1829_p4 = por %p1828_p1, %p1827_p0 }
  0x4c   : > { %p1823_p13 = pneg %p1822_p12 }
  0x4e   : > { %p1830_p7 = pnand %p1829_p4, %p1823_p13 }
  0x50   : > { %1833 = shalt.err (!%p1830_p7)
}
  0x51   : > { %1655 = dma.hbm_to_vmem [thread:$0]  (!%p1996_p5), %s2662_s2, 16, %s197_s28, [#allocation10]  }
  0x52   : > { %s1933_s26 = smov [#allocation12]   ;;  %s1834_s14 = scalar_lea.hbm %s2663_s3, 16 }
  0x53   : > { %s207_s9 = sshll.u32 %s1933_s26, 4  ;;  %p1835_p2 = scmp.ne.s32.totalorder %s2663_s3, %s1834_s14  ;;  %s208_s9 = int_to_ptr.vmem [resolvable:$true] %s207_s9 }
  0x54   : > { %p1841_p9 = scmp.lt.u32.totalorder %s1834_s14, %s2663_s3 }
  0x55   : > { %p1837_p3 = pnand %p1835_p2, %p2013_p8 }
  0x57   : > { %p1838_p6 = pneg %p1837_p3 }
  0x59   : > { %p1843_p10 = pnand %p1841_p9, %p1838_p6 }
  0x5b   : > { %1846 = shalt.err (!%p1843_p10)
}
  0x5c   : > { %s1847_s28 = scalar_lea.vmem %s208_s9, 16  ;;  %s1854_s7 = scalar_lea.vmem %s208_s9, 32 }
  0x5d   : > { %p1848_p11 = scmp.ne.s32.totalorder %s208_s9, %s1847_s28  ;;  %p1855_p0 = scmp.lt.s32.totalorder %s208_s9, %s208_s9 }
  0x5e   : > { %p1856_p1 = scmp.lt.s32.totalorder %s1854_s7, %s1847_s28 }
  0x5f   : > { %p1850_p12 = pnand %p1848_p11, %p2013_p8 }
  0x60   : > { %p1857_p4 = por %p1856_p1, %p1855_p0 }
  0x61   : > { %p1851_p13 = pneg %p1850_p12 }
  0x63   : > { %p1858_p7 = pnand %p1857_p4, %p1851_p13 }
  0x65   : > { %1861 = shalt.err (!%p1858_p7)
}
  0x66   : > { %1658 = dma.hbm_to_vmem [thread:$0]  (!%p1996_p5), %s2663_s3, 16, %s208_s9, [#allocation13]  }
  0x67   : > { %p2700_p2 = scmp.ne.s32.totalorder %s2695_s21, 0 }
  0x69   : > { %220 = sbr.rel (%p2700_p2) target bundleno = 710 (0x2c6), region = 36 }
  0x70   : > { %p2701_p3 = scmp.ne.s32.totalorder %s2694_s20, 0 }
  0x72   : > { %1901 = dma.done.wait (%p2701_p3), [#allocation7], 4096  }
  0x73   : > { %1903 = vsyncadd (%p2701_p3), [#allocation7], 4294963200 }
  0x74   : > { %1905 = dma.done.wait (%p2701_p3), [#allocation10], 1040  }
  0x75   : > { %1907 = vsyncadd (%p2701_p3), [#allocation10], 4294966256 }
  0x76   : > { %1909 = dma.done.wait (%p2701_p3), [#allocation13], 16  }
  0x77   : > { %1911 = vsyncadd (%p2701_p3), [#allocation13], 4294967280  ;;  %v1708_v0 = vld [vmem:[#allocation9] sm:$0xff]   ;;  %v1709_v1 = vld [vmem:[#allocation9 + $0x8] sm:$0xff]   ;;  %p866_p5 = scmp.eq.s32.totalorder %s1918_s15, 0 }
  0x78   : > { %1530 = vmatprep.subr.bf16.mxu0 %v1708_v0  ;;  %1610 = vmatprep.subr.bf16.mxu1 %v1708_v0  ;;  %v1710_v2 = vld [vmem:[#allocation9 + $0x10] sm:$0xff]   ;;  %v1716_v3 = vld [vmem:[#allocation6] sm:$0xff]   ;;  %v1711_v5 = vld [vmem:[#allocation9 + $0x18] sm:$0xff]  }
  0x79   : > { %1531 = vmatpush3.bf16.xpose.msra.mxu0 %v1708_v0  ;;  %1618 = vmatpush3.bf16.xpose.msra.mxu1 %v1708_v0  ;;  %v1717_v4 = vld [vmem:[#allocation6 + $0x80] sm:$0xff]   ;;  %v1713_v7 = vld [vmem:[#allocation9 + $0x28] sm:$0xff]   ;;  %v1714_v8 = vld [vmem:[#allocation9 + $0x30] sm:$0xff]  }
  0x7a   : > { %1532 = vmatprep.subr.bf16.mxu0 %v1709_v1  ;;  %1611 = vmatprep.subr.bf16.mxu1 %v1709_v1  ;;  %v1712_v6 = vld [vmem:[#allocation9 + $0x20] sm:$0xff]   ;;  %v1715_v9 = vld [vmem:[#allocation9 + $0x38] sm:$0xff]   ;;  %v1718_v10 = vld [vmem:[#allocation6 + $0x8] sm:$0xff]  }
  0x7b   : > { %1546 = vmatprep.mubr.bf16.mxu0 %v1716_v3  ;;  %1578 = vmatprep.mubr.bf16.mxu1 %v1717_v4  ;;  %v1719_v11 = vld [vmem:[#allocation6 + $0x88] sm:$0xff]   ;;  %v1720_v12 = vld [vmem:[#allocation6 + $0x10] sm:$0xff]   ;;  %v1722_v14 = vld [vmem:[#allocation6 + $0x18] sm:$0xff]  }
  0x7c   : > { %v1721_v13 = vld [vmem:[#allocation6 + $0x90] sm:$0xff]   ;;  %v1723_v15 = vld [vmem:[#allocation6 + $0x98] sm:$0xff]   ;;  %v1724_v16 = vld [vmem:[#allocation6 + $0x20] sm:$0xff]  }
  0x7d   : > { %v1725_v17 = vld [vmem:[#allocation6 + $0xa0] sm:$0xff]   ;;  %v1726_v18 = vld [vmem:[#allocation6 + $0x28] sm:$0xff]   ;;  %v1728_v20 = vld [vmem:[#allocation6 + $0x30] sm:$0xff]  }
  0x7e   : > { %v1727_v19 = vld [vmem:[#allocation6 + $0xa8] sm:$0xff]   ;;  %v1729_v21 = vld [vmem:[#allocation6 + $0xb0] sm:$0xff]   ;;  %v1730_v22 = vld [vmem:[#allocation6 + $0x38] sm:$0xff]  }
  0x7f   : > { %v1731_v23 = vld [vmem:[#allocation6 + $0xb8] sm:$0xff]   ;;  %v1732_v24 = vld [vmem:[#allocation6 + $0x40] sm:$0xff]   ;;  %v1734_v26 = vld [vmem:[#allocation6 + $0x48] sm:$0xff]  }
  0x80   : > { %v1733_v25 = vld [vmem:[#allocation6 + $0xc0] sm:$0xff]   ;;  %v1735_v27 = vld [vmem:[#allocation6 + $0xc8] sm:$0xff]   ;;  %v1736_v28 = vld [vmem:[#allocation6 + $0x50] sm:$0xff]  }
  0x81   : > { %1533 = vmatpush3.bf16.xpose.msra.mxu0 %v1709_v1  ;;  %1619 = vmatpush3.bf16.xpose.msra.mxu1 %v1709_v1  ;;  %v1737_v29 = vld [vmem:[#allocation6 + $0xd0] sm:$0xff]   ;;  %v1738_v30 = vld [vmem:[#allocation6 + $0x58] sm:$0xff]   ;;  %v1740_v32 = vld [vmem:[#allocation6 + $0x60] sm:$0xff]  }
  0x82   : > { %1534 = vmatprep.subr.bf16.mxu0 %v1710_v2  ;;  %1612 = vmatprep.subr.bf16.mxu1 %v1710_v2  ;;  %v1739_v31 = vld [vmem:[#allocation6 + $0xd8] sm:$0xff]   ;;  %v1741_v33 = vld [vmem:[#allocation6 + $0xe0] sm:$0xff]   ;;  %v1742_v34 = vld [vmem:[#allocation6 + $0x68] sm:$0xff]  }
  0x83   : > { %v1743_v35 = vld [vmem:[#allocation6 + $0xe8] sm:$0xff]   ;;  %v1744_v36 = vld [vmem:[#allocation6 + $0x70] sm:$0xff]   ;;  %v1746_v38 = vld [vmem:[#allocation6 + $0x78] sm:$0xff]  }
  0x84   : > { %v1745_v37 = vld [vmem:[#allocation6 + $0xf0] sm:$0xff]   ;;  %v1747_v39 = vld [vmem:[#allocation6 + $0xf8] sm:$0xff]  }
  0x89   : > { %1535 = vmatpush3.bf16.xpose.msra.mxu0 %v1710_v2  ;;  %1620 = vmatpush3.bf16.xpose.msra.mxu1 %v1710_v2 }
  0x8a   : > { %1536 = vmatprep.subr.bf16.mxu0 %v1711_v5  ;;  %1613 = vmatprep.subr.bf16.mxu1 %v1711_v5 }
  0x91   : > { %1537 = vmatpush3.bf16.xpose.msra.mxu0 %v1711_v5  ;;  %1621 = vmatpush3.bf16.xpose.msra.mxu1 %v1711_v5 }
  0x92   : > { %1538 = vmatprep.subr.bf16.mxu0 %v1712_v6  ;;  %1614 = vmatprep.subr.bf16.mxu1 %v1712_v6 }
  0x99   : > { %1539 = vmatpush3.bf16.xpose.msra.mxu0 %v1712_v6  ;;  %1622 = vmatpush3.bf16.xpose.msra.mxu1 %v1712_v6 }
  0x9a   : > { %1540 = vmatprep.subr.bf16.mxu0 %v1713_v7  ;;  %1615 = vmatprep.subr.bf16.mxu1 %v1713_v7 }
  0xa1   : > { %1541 = vmatpush3.bf16.xpose.msra.mxu0 %v1713_v7  ;;  %1623 = vmatpush3.bf16.xpose.msra.mxu1 %v1713_v7 }
  0xa2   : > { %1542 = vmatprep.subr.bf16.mxu0 %v1714_v8  ;;  %1616 = vmatprep.subr.bf16.mxu1 %v1714_v8 }
  0xa9   : > { %1543 = vmatpush3.bf16.xpose.msra.mxu0 %v1714_v8  ;;  %1624 = vmatpush3.bf16.xpose.msra.mxu1 %v1714_v8 }
  0xaa   : > { %1544 = vmatprep.subr.bf16.mxu0 %v1715_v9  ;;  %1617 = vmatprep.subr.bf16.mxu1 %v1715_v9 }
  0xb1   : > { %1545 = vmatpush3.bf16.xpose.msra.mxu0 %v1715_v9  ;;  %1625 = vmatpush3.bf16.xpose.msra.mxu1 %v1715_v9 }
  0xb8   : > { %1547 = vmatmul.mubr.bf16.vlgmr.msra.gmra.mrb[0].mxu0 %v1718_v10  ;;  %1579 = vmatmul.mubr.bf16.vlgmr.msra.gmra.mrb[0].mxu1 %v1719_v11 }
  0xb9   : > { %1550 = vmatprep.mubr.bf16.mxu0 %v1720_v12  ;;  %1582 = vmatprep.mubr.bf16.mxu1 %v1721_v13 }
  0xc0   : > { %1551 = vmatmul.mubr.bf16.gmra.mrb[4].mxu0 %v1722_v14  ;;  %1583 = vmatmul.mubr.bf16.gmra.mrb[4].mxu1 %v1723_v15 }
  0xc1   : > { %1554 = vmatprep.mubr.bf16.mxu0 %v1724_v16  ;;  %1586 = vmatprep.mubr.bf16.mxu1 %v1725_v17 }
  0xc8   : > { %1555 = vmatmul.mubr.bf16.gmra.mrb[8].mxu0 %v1726_v18  ;;  %1587 = vmatmul.mubr.bf16.gmra.mrb[8].mxu1 %v1727_v19 }
  0xc9   : > { %1558 = vmatprep.mubr.bf16.mxu0 %v1728_v20  ;;  %1590 = vmatprep.mubr.bf16.mxu1 %v1729_v21 }
  0xd0   : > { %1559 = vmatmul.mubr.bf16.gmra.mrb[12].mxu0 %v1730_v22  ;;  %1591 = vmatmul.mubr.bf16.gmra.mrb[12].mxu1 %v1731_v23 }
  0xd1   : > { %1562 = vmatprep.mubr.bf16.mxu0 %v1732_v24  ;;  %1594 = vmatprep.mubr.bf16.mxu1 %v1733_v25 }
  0xd8   : > { %1563 = vmatmul.mubr.bf16.gmra.mrb[16].mxu0 %v1734_v26  ;;  %1595 = vmatmul.mubr.bf16.gmra.mrb[16].mxu1 %v1735_v27 }
  0xd9   : > { %1566 = vmatprep.mubr.bf16.mxu0 %v1736_v28  ;;  %1598 = vmatprep.mubr.bf16.mxu1 %v1737_v29 }
  0xe0   : > { %1567 = vmatmul.mubr.bf16.gmra.mrb[20].mxu0 %v1738_v30  ;;  %1599 = vmatmul.mubr.bf16.gmra.mrb[20].mxu1 %v1739_v31 }
  0xe1   : > { %1570 = vmatprep.mubr.bf16.mxu0 %v1740_v32  ;;  %1602 = vmatprep.mubr.bf16.mxu1 %v1741_v33 }
  0xe8   : > { %1571 = vmatmul.mubr.bf16.gmra.mrb[24].mxu0 %v1742_v34  ;;  %1603 = vmatmul.mubr.bf16.gmra.mrb[24].mxu1 %v1743_v35 }
  0xe9   : > { %1574 = vmatprep.mubr.bf16.mxu0 %v1744_v36  ;;  %1606 = vmatprep.mubr.bf16.mxu1 %v1745_v37 }
  0xf0   : > { %1575 = vmatmul.mubr.bf16.gmra.mrb[28].mxu0 %v1746_v38  ;;  %1607 = vmatmul.mubr.bf16.gmra.mrb[28].mxu1 %v1747_v39 }
 0x18b   : > { %v2102_v40 = vpop.f32.mrb[0].mxu0  ;;  %v2104_v41 = vpop.f32.mrb[0].mxu1 }
 0x18c   : > { %2702 = vst [vmem:[#allocation19_spill] sm:$0xff] %v2102_v40  ;;  %v2106_v42 = vpop.f32.mrb[1].mxu0  ;;  %v2108_v43 = vpop.f32.mrb[1].mxu1 }
 0x18d   : > { %2703 = vst [vmem:[#allocation20_spill] sm:$0xff] %v2106_v42  ;;  %v2110_v44 = vpop.f32.mrb[2].mxu0  ;;  %v2112_v45 = vpop.f32.mrb[2].mxu1 }
 0x18e   : > { %v2114_v46 = vpop.f32.mrb[3].mxu0  ;;  %v2116_v47 = vpop.f32.mrb[3].mxu1 }
 0x18f   : > { %2704 = vst [vmem:[#allocation21_spill] sm:$0xff] %v2114_v46 }
 0x193   : > { %v2118_v48 = vpop.f32.mrb[4].mxu0  ;;  %v2120_v49 = vpop.f32.mrb[4].mxu1 }
 0x194   : > { %v2122_v50 = vpop.f32.mrb[5].mxu0  ;;  %v2124_v51 = vpop.f32.mrb[5].mxu1 }
 0x195   : > { %v2126_v52 = vpop.f32.mrb[6].mxu0  ;;  %v2128_v53 = vpop.f32.mrb[6].mxu1 }
 0x196   : > { %v2130_v54 = vpop.f32.mrb[7].mxu0  ;;  %v2132_v55 = vpop.f32.mrb[7].mxu1 }
 0x19b   : > { %v2134_v56 = vpop.f32.mrb[8].mxu0  ;;  %v2136_v57 = vpop.f32.mrb[8].mxu1 }
 0x19c   : > { %2705 = vst [vmem:[#allocation22_spill] sm:$0xff] %v2136_v57  ;;  %v2138_v58 = vpop.f32.mrb[9].mxu0  ;;  %v2140_v59 = vpop.f32.mrb[9].mxu1 }
 0x19d   : > { %v2142_v60 = vpop.f32.mrb[10].mxu0  ;;  %v2144_v61 = vpop.f32.mrb[10].mxu1 }
 0x19e   : > { %2706 = vst [vmem:[#allocation23_spill] sm:$0xff] %v2144_v61  ;;  %v2146_v62 = vpop.f32.mrb[11].mxu0  ;;  %v2148_v63 = vpop.f32.mrb[11].mxu1 }
 0x19f   : > { %2707 = vst [vmem:[#allocation24_spill] sm:$0xff] %v2148_v63 }
 0x1a3   : > { %v2150_v0 = vpop.f32.mrb[12].mxu0  ;;  %v2152_v1 = vpop.f32.mrb[12].mxu1 }
 0x1a4   : > { %2708 = vst [vmem:[#allocation25_spill] sm:$0xff] %v2152_v1  ;;  %v2154_v2 = vpop.f32.mrb[13].mxu0  ;;  %v2156_v3 = vpop.f32.mrb[13].mxu1 }
 0x1a5   : > { %2709 = vst [vmem:[#allocation26_spill] sm:$0xff] %v2156_v3  ;;  %v2158_v4 = vpop.f32.mrb[14].mxu0  ;;  %v2160_v5 = vpop.f32.mrb[14].mxu1 }
 0x1a6   : > { %2710 = vst [vmem:[#allocation27_spill] sm:$0xff] %v2160_v5  ;;  %v2162_v6 = vpop.f32.mrb[15].mxu0  ;;  %v2164_v7 = vpop.f32.mrb[15].mxu1 }
 0x1a7   : > { %2711 = vst [vmem:[#allocation28_spill] sm:$0xff] %v2164_v7 }
 0x1ab   : > { %v2166_v8 = vpop.f32.mrb[16].mxu0  ;;  %v2168_v9 = vpop.f32.mrb[16].mxu1 }
 0x1ac   : > { %2712 = vst [vmem:[#allocation29_spill] sm:$0xff] %v2168_v9  ;;  %v2170_v10 = vpop.f32.mrb[17].mxu0  ;;  %v2172_v11 = vpop.f32.mrb[17].mxu1 }
 0x1ad   : > { %2713 = vst [vmem:[#allocation30_spill] sm:$0xff] %v2172_v11  ;;  %v2174_v12 = vpop.f32.mrb[18].mxu0  ;;  %v2176_v13 = vpop.f32.mrb[18].mxu1 }
 0x1ae   : > { %2714 = vst [vmem:[#allocation31_spill] sm:$0xff] %v2176_v13  ;;  %v2178_v14 = vpop.f32.mrb[19].mxu0  ;;  %v2180_v15 = vpop.f32.mrb[19].mxu1 }
 0x1af   : > { %2715 = vst [vmem:[#allocation32_spill] sm:$0xff] %v2180_v15 }
 0x1b3   : > { %v2182_v16 = vpop.f32.mrb[20].mxu0  ;;  %v2184_v17 = vpop.f32.mrb[20].mxu1 }
 0x1b4   : > { %2716 = vst [vmem:[#allocation33_spill] sm:$0xff] %v2184_v17  ;;  %v2186_v18 = vpop.f32.mrb[21].mxu0  ;;  %v2188_v19 = vpop.f32.mrb[21].mxu1 }
 0x1b5   : > { %2717 = vst [vmem:[#allocation34_spill] sm:$0xff] %v2188_v19  ;;  %v2190_v20 = vpop.f32.mrb[22].mxu0  ;;  %v2192_v21 = vpop.f32.mrb[22].mxu1 }
 0x1b6   : > { %2718 = vst [vmem:[#allocation35_spill] sm:$0xff] %v2192_v21  ;;  %v2194_v22 = vpop.f32.mrb[23].mxu0  ;;  %v2196_v23 = vpop.f32.mrb[23].mxu1 }
 0x1b7   : > { %2719 = vst [vmem:[#allocation36_spill] sm:$0xff] %v2196_v23 }
 0x1bb   : > { %v2198_v24 = vpop.f32.mrb[24].mxu0  ;;  %v2200_v25 = vpop.f32.mrb[24].mxu1 }
 0x1bc   : > { %2720 = vst [vmem:[#allocation37_spill] sm:$0xff] %v2200_v25  ;;  %v2202_v26 = vpop.f32.mrb[25].mxu0  ;;  %v2204_v27 = vpop.f32.mrb[25].mxu1 }
 0x1bd   : > { %2721 = vst [vmem:[#allocation38_spill] sm:$0xff] %v2204_v27  ;;  %v2206_v28 = vpop.f32.mrb[26].mxu0  ;;  %v2208_v29 = vpop.f32.mrb[26].mxu1 }
 0x1be   : > { %2722 = vst [vmem:[#allocation39_spill] sm:$0xff] %v2208_v29  ;;  %v2210_v30 = vpop.f32.mrb[27].mxu0  ;;  %v2212_v31 = vpop.f32.mrb[27].mxu1  ;;  %v1934_v29 = vmov (%p866_p5), 0.0  }
 0x1bf   : > { %2723 = vst [vmem:[#allocation40_spill] sm:$0xff] %v2212_v31  ;;  %872 = vst [vmem:[#allocation2] sm:$0x1] (%p866_p5), %v1934_v29 }
 0x1c0   : > { %873 = vst [vmem:[#allocation3] sm:$0x1] (%p866_p5), %v1934_v29 }
 0x1c1   : > { %871 = sbr.rel (!%p866_p5) target bundleno = 456 (0x1c8), region = 56 }
 0x1c3   : > { %v2214_v32 = vpop.f32.mrb[28].mxu0  ;;  %v2216_v33 = vpop.f32.mrb[28].mxu1 }
 0x1c4   : > { %2724 = vst [vmem:[#allocation41_spill] sm:$0xff] %v2216_v33  ;;  %v2218_v34 = vpop.f32.mrb[29].mxu0  ;;  %v2220_v35 = vpop.f32.mrb[29].mxu1 }
 0x1c5   : > { %2725 = vst [vmem:[#allocation42_spill] sm:$0xff] %v2220_v35  ;;  %v2222_v36 = vpop.f32.mrb[30].mxu0  ;;  %v2224_v37 = vpop.f32.mrb[30].mxu1 }
 0x1c6   : > { %2726 = vst [vmem:[#allocation43_spill] sm:$0xff] %v2224_v37  ;;  %v2226_v38 = vpop.f32.mrb[31].mxu0  ;;  %v2228_v39 = vpop.f32.mrb[31].mxu1 }
 0x1c7   : > { %2727 = vst [vmem:[#allocation44_spill] sm:$0xff] %v2228_v39 }
 0x1c8 PF: > { %p1481_p8 = scmp.ne.s32.totalorder %s1918_s15, 0 }
 0x1c9   : > { %v878_v33 = vadd.f32 (!%p1481_p8), %v2114_v46, %v2106_v42  ;;  %v950_v21 = vmul.f32 (!%p1481_p8), %v2106_v42, %v2106_v42  ;;  %v951_v17 = vmul.f32 (!%p1481_p8), %v2114_v46, %v2114_v46 }
 0x1ca   : > { %876 = sbr.rel (%p1481_p8) target bundleno = 610 (0x262), region = 60 }
 0x1cb   : > { %v879_v35 = vadd.f32 (!%p1481_p8), %v2102_v40, %v878_v33 }
 0x1cd   : > { %v880_v37 = vadd.f32 (!%p1481_p8), %v2110_v44, %v879_v35  ;;  %v952_v35 = vmul.f32 (!%p1481_p8), %v2102_v40, %v2102_v40 }
 0x1cf   : > { %v881_v25 = vadd.f32 (!%p1481_p8), %v880_v37, %v2122_v50 }
 0x1d1   : > { %v882_v39 = vadd.f32 %v881_v25, %v2130_v54  ;;  %v953_v25 = vmul.f32 %v2110_v44, %v2110_v44 }
 0x1d3   : > { %v883_v31 = vadd.f32 %v2118_v48, %v882_v39  ;;  %v1014_v39 = vadd.f32 %v951_v17, %v950_v21  ;;  %v957_v21 = vmul.f32 %v2126_v52, %v2126_v52 }
 0x1d5   : > { %v884_v27 = vadd.f32 %v2126_v52, %v883_v31  ;;  %v1015_v42 = vadd.f32 %v1014_v39, %v952_v35  ;;  %v958_v39 = vmul.f32 %v2138_v58, %v2138_v58 }
 0x1d7   : > { %v885_v29 = vadd.f32 %v884_v27, %v2138_v58  ;;  %v954_v27 = vmul.f32 %v2122_v50, %v2122_v50  ;;  %v1016_v46 = vadd.f32 %v1015_v42, %v953_v25 }
 0x1d9   : > { %v886_v33 = vadd.f32 %v885_v29, %v2146_v62  ;;  %v955_v29 = vmul.f32 %v2130_v54, %v2130_v54  ;;  %v1017_v19 = vadd.f32 %v1016_v46, %v954_v27 }
 0x1db   : > { %v887_v37 = vadd.f32 %v2134_v56, %v886_v33  ;;  %v956_v33 = vmul.f32 %v2118_v48, %v2118_v48 }
 0x1dd   : > { %v888_v31 = vadd.f32 %v2142_v60, %v887_v37  ;;  %v1018_v37 = vadd.f32 %v1017_v19, %v955_v29  ;;  %v961_v29 = vmul.f32 %v2142_v60, %v2142_v60 }
 0x1df   : > { %v889_v23 = vadd.f32 %v888_v31, %v2154_v2  ;;  %v1019_v31 = vadd.f32 %v1018_v37, %v956_v33  ;;  %v962_v37 = vmul.f32 %v2154_v2, %v2154_v2 }
 0x1e1   : > { %v890_v40 = vadd.f32 %v889_v23, %v2162_v6  ;;  %v959_v23 = vmul.f32 %v2146_v62, %v2146_v62  ;;  %v1020_v25 = vadd.f32 %v1019_v31, %v957_v21  ;;  %v963_v31 = vmul.f32 %v2162_v6, %v2162_v6 }
 0x1e3   : > { %v891_v17 = vadd.f32 %v2150_v0, %v890_v40  ;;  %v960_v40 = vmul.f32 %v2134_v56, %v2134_v56  ;;  %v1021_v27 = vadd.f32 %v1020_v25, %v958_v39  ;;  %v964_v25 = vmul.f32 %v2150_v0, %v2150_v0 }
 0x1e5   : > { %v892_v35 = vadd.f32 %v2158_v4, %v891_v17  ;;  %v1022_v17 = vadd.f32 %v1021_v27, %v959_v23  ;;  %v965_v27 = vmul.f32 %v2158_v4, %v2158_v4 }
 0x1e7   : > { %v893_v42 = vadd.f32 %v892_v35, %v2170_v10  ;;  %v1023_v35 = vadd.f32 %v1022_v17, %v960_v40  ;;  %v966_v17 = vmul.f32 %v2170_v10, %v2170_v10 }
 0x1e9   : > { %v894_v46 = vadd.f32 %v893_v42, %v2178_v14  ;;  %v1024_v42 = vadd.f32 %v1023_v35, %v961_v29  ;;  %v967_v35 = vmul.f32 %v2178_v14, %v2178_v14 }
 0x1eb   : > { %v895_v19 = vadd.f32 %v2166_v8, %v894_v46  ;;  %v1025_v46 = vadd.f32 %v1024_v42, %v962_v37  ;;  %v968_v42 = vmul.f32 %v2166_v8, %v2166_v8 }
 0x1ed   : > { %v896_v33 = vadd.f32 %v2174_v12, %v895_v19  ;;  %v1026_v19 = vadd.f32 %v1025_v46, %v963_v31  ;;  %v969_v46 = vmul.f32 %v2174_v12, %v2174_v12 }
 0x1ef   : > { %v897_v21 = vadd.f32 %v896_v33, %v2186_v18  ;;  %v1027_v33 = vadd.f32 %v1026_v19, %v964_v25  ;;  %v970_v19 = vmul.f32 %v2186_v18, %v2186_v18 }
 0x1f1   : > { %v898_v39 = vadd.f32 %v897_v21, %v2194_v22  ;;  %v1028_v21 = vadd.f32 %v1027_v33, %v965_v27  ;;  %v971_v33 = vmul.f32 %v2194_v22, %v2194_v22 }
 0x1f3   : > { %v899_v23 = vadd.f32 %v2182_v16, %v898_v39  ;;  %v1029_v39 = vadd.f32 %v1028_v21, %v966_v17  ;;  %v972_v21 = vmul.f32 %v2182_v16, %v2182_v16 }
 0x1f5   : > { %v900_v40 = vadd.f32 %v2190_v20, %v899_v23  ;;  %v1030_v23 = vadd.f32 %v1029_v39, %v967_v35  ;;  %v973_v39 = vmul.f32 %v2190_v20, %v2190_v20 }
 0x1f7   : > { %v901_v29 = vadd.f32 %v900_v40, %v2202_v26  ;;  %v1031_v40 = vadd.f32 %v1030_v23, %v968_v42  ;;  %v974_v23 = vmul.f32 %v2202_v26, %v2202_v26 }
 0x1f9   : > { %v902_v37 = vadd.f32 %v901_v29, %v2210_v30  ;;  %v1032_v29 = vadd.f32 %v1031_v40, %v969_v46  ;;  %v975_v40 = vmul.f32 %v2210_v30, %v2210_v30 }
 0x1fb   : > { %v903_v31 = vadd.f32 %v2198_v24, %v902_v37  ;;  %v1033_v37 = vadd.f32 %v1032_v29, %v970_v19  ;;  %v976_v29 = vmul.f32 %v2198_v24, %v2198_v24 }
 0x1fd   : > { %v904_v25 = vadd.f32 %v2206_v28, %v903_v31  ;;  %v1034_v31 = vadd.f32 %v1033_v37, %v971_v33  ;;  %v977_v37 = vmul.f32 %v2206_v28, %v2206_v28 }
 0x1ff   : > { %v905_v27 = vadd.f32 %v904_v25, %v2218_v34  ;;  %v1035_v25 = vadd.f32 %v1034_v31, %v972_v21  ;;  %v978_v31 = vmul.f32 %v2218_v34, %v2218_v34 }
 0x201   : > { %v906_v17 = vadd.f32 %v905_v27, %v2226_v38  ;;  %v1036_v27 = vadd.f32 %v1035_v25, %v973_v39  ;;  %v979_v25 = vmul.f32 %v2226_v38, %v2226_v38 }
 0x203   : > { %v907_v35 = vadd.f32 %v2214_v32, %v906_v17  ;;  %v1037_v17 = vadd.f32 %v1036_v27, %v974_v23  ;;  %v980_v27 = vmul.f32 %v2214_v32, %v2214_v32 }
 0x205   : > { %v908_v42 = vadd.f32 %v2222_v36, %v907_v35  ;;  %v1038_v35 = vadd.f32 %v1037_v17, %v975_v40  ;;  %v981_v17 = vmul.f32 %v2222_v36, %v2222_v36 }
 0x207   : > { %v909_v46 = vadd.f32 %v908_v42, %v2108_v43  ;;  %v1039_v42 = vadd.f32 %v1038_v35, %v976_v29  ;;  %v982_v35 = vmul.f32 %v2108_v43, %v2108_v43 }
 0x209   : > { %v910_v19 = vadd.f32 %v909_v46, %v2116_v47  ;;  %v1040_v46 = vadd.f32 %v1039_v42, %v977_v37  ;;  %v983_v42 = vmul.f32 %v2116_v47, %v2116_v47 }
 0x20b   : > { %v911_v33 = vadd.f32 %v2104_v41, %v910_v19  ;;  %v1041_v19 = vadd.f32 %v1040_v46, %v978_v31  ;;  %v984_v46 = vmul.f32 %v2104_v41, %v2104_v41 }
 0x20d   : > { %v912_v21 = vadd.f32 %v2112_v45, %v911_v33  ;;  %v1042_v33 = vadd.f32 %v1041_v19, %v979_v25  ;;  %v985_v19 = vmul.f32 %v2112_v45, %v2112_v45 }
 0x20f   : > { %v913_v39 = vadd.f32 %v912_v21, %v2124_v51  ;;  %v1043_v21 = vadd.f32 %v1042_v33, %v980_v27  ;;  %v986_v33 = vmul.f32 %v2124_v51, %v2124_v51 }
 0x211   : > { %v914_v23 = vadd.f32 %v913_v39, %v2132_v55  ;;  %v1044_v39 = vadd.f32 %v1043_v21, %v981_v17  ;;  %v987_v21 = vmul.f32 %v2132_v55, %v2132_v55 }
 0x213   : > { %v915_v40 = vadd.f32 %v2120_v49, %v914_v23  ;;  %v1045_v23 = vadd.f32 %v1044_v39, %v982_v35  ;;  %v988_v39 = vmul.f32 %v2120_v49, %v2120_v49 }
 0x215   : > { %v916_v29 = vadd.f32 %v2128_v53, %v915_v40  ;;  %v1046_v40 = vadd.f32 %v1045_v23, %v983_v42  ;;  %v989_v23 = vmul.f32 %v2128_v53, %v2128_v53 }
 0x217   : > { %v917_v37 = vadd.f32 %v916_v29, %v2140_v59  ;;  %v1047_v29 = vadd.f32 %v1046_v40, %v984_v46  ;;  %v990_v40 = vmul.f32 %v2140_v59, %v2140_v59 }
 0x219   : > { %v918_v31 = vadd.f32 %v917_v37, %v2148_v63  ;;  %v1048_v37 = vadd.f32 %v1047_v29, %v985_v19  ;;  %v991_v29 = vmul.f32 %v2148_v63, %v2148_v63  ;;  %v2728_v63 = vld [vmem:[#allocation34_spill] sm:$0xff] }
 0x21b   : > { %v919_v25 = vadd.f32 %v2136_v57, %v918_v31  ;;  %v1049_v31 = vadd.f32 %v1048_v37, %v986_v33  ;;  %v992_v37 = vmul.f32 %v2136_v57, %v2136_v57  ;;  %v2729_v57 = vld [vmem:[#allocation36_spill] sm:$0xff] }
 0x21d   : > { %v920_v27 = vadd.f32 %v2144_v61, %v919_v25  ;;  %v1050_v25 = vadd.f32 %v1049_v31, %v987_v21  ;;  %v993_v31 = vmul.f32 %v2144_v61, %v2144_v61  ;;  %v2730_v61 = vld [vmem:[#allocation33_spill] sm:$0xff] }
 0x21f   : > { %v921_v17 = vadd.f32 %v920_v27, %v2156_v3  ;;  %v1051_v27 = vadd.f32 %v1050_v25, %v988_v39  ;;  %v994_v25 = vmul.f32 %v2156_v3, %v2156_v3  ;;  %v2731_v3 = vld [vmem:[#allocation35_spill] sm:$0xff] }
 0x221   : > { %v922_v35 = vadd.f32 %v921_v17, %v2164_v7  ;;  %v1052_v17 = vadd.f32 %v1051_v27, %v989_v23  ;;  %v995_v27 = vmul.f32 %v2164_v7, %v2164_v7  ;;  %v2732_v7 = vld [vmem:[#allocation38_spill] sm:$0xff] }
 0x223   : > { %v923_v42 = vadd.f32 %v2152_v1, %v922_v35  ;;  %v1053_v35 = vadd.f32 %v1052_v17, %v990_v40  ;;  %v996_v17 = vmul.f32 %v2152_v1, %v2152_v1  ;;  %v2733_v1 = vld [vmem:[#allocation40_spill] sm:$0xff] }
 0x225   : > { %v924_v46 = vadd.f32 %v2160_v5, %v923_v42  ;;  %v1054_v42 = vadd.f32 %v1053_v35, %v991_v29  ;;  %v997_v35 = vmul.f32 %v2160_v5, %v2160_v5  ;;  %v2734_v5 = vld [vmem:[#allocation37_spill] sm:$0xff] }
 0x227   : > { %v925_v19 = vadd.f32 %v924_v46, %v2172_v11  ;;  %v1055_v46 = vadd.f32 %v1054_v42, %v992_v37  ;;  %v998_v42 = vmul.f32 %v2172_v11, %v2172_v11  ;;  %v2735_v11 = vld [vmem:[#allocation39_spill] sm:$0xff] }
 0x229   : > { %v926_v33 = vadd.f32 %v925_v19, %v2180_v15  ;;  %v1056_v19 = vadd.f32 %v1055_v46, %v993_v31  ;;  %v999_v46 = vmul.f32 %v2180_v15, %v2180_v15  ;;  %v2736_v15 = vld [vmem:[#allocation42_spill] sm:$0xff] }
 0x22b   : > { %v927_v21 = vadd.f32 %v2168_v9, %v926_v33  ;;  %v1057_v33 = vadd.f32 %v1056_v19, %v994_v25  ;;  %v1000_v19 = vmul.f32 %v2168_v9, %v2168_v9  ;;  %v2737_v9 = vld [vmem:[#allocation44_spill] sm:$0xff] }
 0x22d   : > { %v928_v39 = vadd.f32 %v2176_v13, %v927_v21  ;;  %v1058_v21 = vadd.f32 %v1057_v33, %v995_v27  ;;  %v1001_v33 = vmul.f32 %v2176_v13, %v2176_v13  ;;  %v2738_v13 = vld [vmem:[#allocation41_spill] sm:$0xff] }
 0x22f   : > { %v929_v23 = vadd.f32 %v928_v39, %v2728_v63  ;;  %v1059_v39 = vadd.f32 %v1058_v21, %v996_v17  ;;  %v1002_v21 = vmul.f32 %v2728_v63, %v2728_v63  ;;  %v2739_v63 = vld [vmem:[#allocation43_spill] sm:$0xff] }
 0x231   : > { %v930_v40 = vadd.f32 %v929_v23, %v2729_v57  ;;  %v1060_v23 = vadd.f32 %v1059_v39, %v997_v35  ;;  %v1003_v39 = vmul.f32 %v2729_v57, %v2729_v57 }
 0x233   : > { %v931_v29 = vadd.f32 %v2730_v61, %v930_v40  ;;  %v1061_v40 = vadd.f32 %v1060_v23, %v998_v42  ;;  %v1004_v23 = vmul.f32 %v2730_v61, %v2730_v61  ;;  %v1008_v61 = vmul.f32 %v2734_v5, %v2734_v5 }
 0x235   : > { %v932_v37 = vadd.f32 %v2731_v3, %v931_v29  ;;  %v1062_v29 = vadd.f32 %v1061_v40, %v999_v46  ;;  %v1005_v40 = vmul.f32 %v2731_v3, %v2731_v3  ;;  %v1009_v3 = vmul.f32 %v2735_v11, %v2735_v11 }
 0x237   : > { %v933_v31 = vadd.f32 %v932_v37, %v2732_v7  ;;  %v1063_v37 = vadd.f32 %v1062_v29, %v1000_v19  ;;  %v1006_v29 = vmul.f32 %v2732_v7, %v2732_v7  ;;  %v1010_v7 = vmul.f32 %v2736_v15, %v2736_v15 }
 0x239   : > { %v934_v25 = vadd.f32 %v933_v31, %v2733_v1  ;;  %v1064_v31 = vadd.f32 %v1063_v37, %v1001_v33  ;;  %v1007_v33 = vmul.f32 %v2733_v1, %v2733_v1  ;;  %v1011_v1 = vmul.f32 %v2737_v9, %v2737_v9 }
 0x23b   : > { %v935_v27 = vadd.f32 %v2734_v5, %v934_v25  ;;  %v1065_v25 = vadd.f32 %v1064_v31, %v1002_v21  ;;  %v1012_v5 = vmul.f32 %v2738_v13, %v2738_v13 }
 0x23d   : > { %v936_v17 = vadd.f32 %v2735_v11, %v935_v27  ;;  %v1066_v27 = vadd.f32 %v1065_v25, %v1003_v39  ;;  %v1013_v11 = vmul.f32 %v2739_v63, %v2739_v63 }
 0x23f   : > { %v937_v35 = vadd.f32 %v936_v17, %v2736_v15  ;;  %v1067_v17 = vadd.f32 %v1066_v27, %v1004_v23 }
 0x241   : > { %v938_v42 = vadd.f32 %v937_v35, %v2737_v9  ;;  %v1068_v37 = vadd.f32 %v1067_v17, %v1005_v40  ;;  %v877_v40 = vld [vmem:[#allocation2] sm:$0x1] }
 0x243   : > { %v939_v46 = vadd.f32 %v2738_v13, %v938_v42  ;;  %v1069_v21 = vadd.f32 %v1068_v37, %v1006_v29 }
 0x245   : > { %v940_v19 = vadd.f32 %v2739_v63, %v939_v46  ;;  %v1070_v39 = vadd.f32 %v1069_v21, %v1007_v33  ;;  %v949_v21 = vld [vmem:[#allocation3] sm:$0x1] }
 0x247   : > { %v941_v57 = vrot.slane %v940_v19, 4  ;;  %v1071_v23 = vadd.f32 %v1070_v39, %v1008_v61 }
 0x249   : > { %v942_v35 = vadd.f32 %v941_v57, %v940_v19  ;;  %v1072_v46 = vadd.f32 %v1071_v23, %v1009_v3 }
 0x24b   : > { %v943_v31 = vrot.slane %v942_v35, 2  ;;  %v1073_v19 = vadd.f32 %v1072_v46, %v1010_v7 }
 0x24d   : > { %v944_v42 = vadd.f32 %v943_v31, %v942_v35  ;;  %v1074_v17 = vadd.f32 %v1073_v19, %v1011_v1 }
 0x24f   : > { %v945_v25 = vrot.slane %v944_v42, 1  ;;  %v1075_v57 = vadd.f32 %v1074_v17, %v1012_v5 }
 0x251   : > { %v946_v27 = vadd.f32 %v945_v25, %v944_v42  ;;  %v1076_v15 = vadd.f32 %v1075_v57, %v1013_v11 }
 0x253   : > { %v947_v29 = vadd.f32 %v946_v27, %v877_v40  ;;  %v1077_v33 = vrot.slane %v1076_v15, 4 }
 0x255   : > { %948 = vst [vmem:[#allocation2] sm:$0x1] %v947_v29  ;;  %v1078_v37 = vadd.f32 %v1077_v33, %v1076_v15 }
 0x257   : > { %v1079_v35 = vrot.slane %v1078_v37, 2 }
 0x259   : > { %v1080_v61 = vadd.f32 %v1079_v35, %v1078_v37 }
 0x25b   : > { %v1081_v9 = vrot.slane %v1080_v61, 1 }
 0x25d   : > { %v1082_v31 = vadd.f32 %v1081_v9, %v1080_v61 }
 0x25f   : > { %v1083_v3 = vadd.f32 %v1082_v31, %v949_v21 }
 0x261   : > { %1084 = vst [vmem:[#allocation3] sm:$0x1] %v1083_v3 }
 0x262 PF: > { %1086 = sbr.rel (!%p866_p5) target bundleno = 641 (0x281), region = 64  ;;  %v1087_v13 = vld [vmem:[#allocation2] sm:$0x1] (%p866_p5)  ;;  %v1095_v1 = vld [vmem:[#allocation11] sm:$0x1] (%p866_p5) }
 0x263   : > { %v1088_v63 = vmul.f32 (%p866_p5), 0.001953125, %v1087_v13  ;;  %v1098_v27 = vld [vmem:[#allocation12] sm:$0x1] (%p866_p5) }
 0x265   : > { %v1091_v7 = vmul.f32 (%p866_p5), %v1088_v63, %v1088_v63 }
 0x268   : > { %v1089_v39 = vld [vmem:[#allocation3] sm:$0x1] (%p866_p5) }
 0x269   : > { %v1090_v42 = vmul.f32 0.001953125, %v1089_v39 }
 0x26b   : > { %v1092_v23 = vsub.f32 %v1090_v42, %v1091_v7 }
 0x26d   : > { %v1093_v25 = vadd.f32 1e-05, %v1092_v23 }
 0x26f   : > { %1748 = vrsqrt.f32 %v1093_v25 }
 0x279   : > { %v1749_v46 = vpop.eup %1748 }
 0x27a   : > { %v1096_v40 = vmul.f32 %v1749_v46, %v1095_v1 }
 0x27c   : > { %1097 = vst [vmem:[#allocation4] sm:$0x1] %v1096_v40  ;;  %v1099_v5 = vmul.f32 %v1096_v40, %v1088_v63 }
 0x27e   : > { %v1100_v19 = vsub.f32 %v1098_v27, %v1099_v5 }
 0x280   : > { %1101 = vst [vmem:[#allocation5] sm:$0x1] %v1100_v19 }
 0x281 PF: > { %p1482_p6 = scmp.ne.s32.totalorder %s1918_s15, 1 }
 0x282   : > { %v2740_v17 = vld [vmem:[#allocation20_spill] sm:$0xff] (!%p1482_p6)  ;;  %v2741_v15 = vld [vmem:[#allocation21_spill] sm:$0xff] (!%p1482_p6)  ;;  %v2742_v37 = vld [vmem:[#allocation19_spill] sm:$0xff] (!%p1482_p6) }
 0x283   : > { %1105 = sbr.rel (%p1482_p6) target bundleno = 686 (0x2ae), region = 68  ;;  %v2428_v29 = vld [vmem:[#allocation4] ss:$0 sm:$0xff] (!%p1482_p6) }
 0x284   : > { %v1113_v57 = vmul.f32 (!%p1482_p6), %v2428_v29, %v2740_v17  ;;  %v1114_v33 = vmul.f32 (!%p1482_p6), %v2428_v29, %v2741_v15  ;;  %v1115_v35 = vmul.f32 (!%p1482_p6), %v2742_v37, %v2428_v29  ;;  %v1116_v61 = vmul.f32 (!%p1482_p6), %v2110_v44, %v2428_v29 }
 0x285   : > { %v1117_v9 = vmul.f32 (!%p1482_p6), %v2428_v29, %v2122_v50  ;;  %v1118_v21 = vmul.f32 (!%p1482_p6), %v2428_v29, %v2130_v54  ;;  %v1119_v31 = vmul.f32 (!%p1482_p6), %v2118_v48, %v2428_v29  ;;  %v1120_v3 = vmul.f32 (!%p1482_p6), %v2126_v52, %v2428_v29 }
 0x286   : > { %v1121_v48 = vmul.f32 (!%p1482_p6), %v2428_v29, %v2138_v58  ;;  %v1122_v52 = vmul.f32 (!%p1482_p6), %v2428_v29, %v2146_v62  ;;  %v1123_v23 = vmul.f32 (!%p1482_p6), %v2134_v56, %v2428_v29  ;;  %v1124_v25 = vmul.f32 (!%p1482_p6), %v2142_v60, %v2428_v29 }
 0x287   : > { %v2430_v11 = vld [vmem:[#allocation5] ss:$0 sm:$0xff] (!%p1482_p6)  ;;  %v1125_v1 = vmul.f32 (!%p1482_p6), %v2428_v29, %v2154_v2  ;;  %v1126_v46 = vmul.f32 (!%p1482_p6), %v2428_v29, %v2162_v6  ;;  %v1127_v58 = vmul.f32 (!%p1482_p6), %v2150_v0, %v2428_v29  ;;  %v1128_v62 = vmul.f32 (!%p1482_p6), %v2158_v4, %v2428_v29 }
 0x288   : > { %v1184_v13 = vadd.f32 (!%p1482_p6), %v2430_v11, %v1113_v57  ;;  %v1185_v39 = vadd.f32 (!%p1482_p6), %v2430_v11, %v1114_v33  ;;  %v1186_v63 = vadd.f32 (!%p1482_p6), %v2430_v11, %v1115_v35  ;;  %v1187_v44 = vadd.f32 (!%p1482_p6), %v2430_v11, %v1116_v61 }
 0x289   : > { %v1188_v42 = vadd.f32 (!%p1482_p6), %v2430_v11, %v1117_v9  ;;  %v1189_v50 = vadd.f32 (!%p1482_p6), %v2430_v11, %v1118_v21  ;;  %v1190_v54 = vadd.f32 (!%p1482_p6), %v2430_v11, %v1119_v31  ;;  %v1191_v7 = vadd.f32 (!%p1482_p6), %v2430_v11, %v1120_v3 }
 0x28a   : > { %1248 = vst [vmem:[#allocation14] sm:$0xff] %v1184_v13  ;;  %1249 = vst [vmem:[#allocation14 + $0x8] sm:$0xff] %v1185_v39  ;;  %v1192_v56 = vadd.f32 %v2430_v11, %v1121_v48  ;;  %v1193_v60 = vadd.f32 %v2430_v11, %v1122_v52  ;;  %v1194_v40 = vadd.f32 %v2430_v11, %v1123_v23 }
 0x28b   : > { %1250 = vst [vmem:[#allocation14 + $0x10] sm:$0xff] %v1186_v63  ;;  %1251 = vst [vmem:[#allocation14 + $0x18] sm:$0xff] %v1187_v44  ;;  %v1195_v27 = vadd.f32 %v2430_v11, %v1124_v25  ;;  %v1196_v5 = vadd.f32 %v2430_v11, %v1125_v1  ;;  %v1197_v2 = vadd.f32 %v2430_v11, %v1126_v46 }
 0x28c   : > { %1252 = vst [vmem:[#allocation14 + $0x20] sm:$0xff] %v1188_v42  ;;  %1253 = vst [vmem:[#allocation14 + $0x28] sm:$0xff] %v1189_v50  ;;  %v1198_v6 = vadd.f32 %v2430_v11, %v1127_v58  ;;  %v1199_v19 = vadd.f32 %v2430_v11, %v1128_v62  ;;  %v1129_v0 = vmul.f32 %v2428_v29, %v2170_v10  ;;  %v2744_v58 = vld [vmem:[#allocation22_spill] sm:$0xff] }
 0x28d   : > { %1254 = vst [vmem:[#allocation14 + $0x30] sm:$0xff] %v1190_v54  ;;  %1255 = vst [vmem:[#allocation14 + $0x38] sm:$0xff] %v1191_v7  ;;  %v1130_v4 = vmul.f32 %v2428_v29, %v2178_v14  ;;  %v1131_v17 = vmul.f32 %v2166_v8, %v2428_v29  ;;  %v1132_v57 = vmul.f32 %v2174_v12, %v2428_v29 }
 0x28e   : > { %1256 = vst [vmem:[#allocation14 + $0x40] sm:$0xff] %v1192_v56  ;;  %1257 = vst [vmem:[#allocation14 + $0x48] sm:$0xff] %v1193_v60  ;;  %v1133_v15 = vmul.f32 %v2428_v29, %v2186_v18  ;;  %v1134_v33 = vmul.f32 %v2428_v29, %v2194_v22  ;;  %v1135_v10 = vmul.f32 %v2182_v16, %v2428_v29  ;;  %v2745_v56 = vld [vmem:[#allocation23_spill] sm:$0xff] }
 0x28f   : > { %1258 = vst [vmem:[#allocation14 + $0x50] sm:$0xff] %v1194_v40  ;;  %1259 = vst [vmem:[#allocation14 + $0x58] sm:$0xff] %v1195_v27  ;;  %v1136_v14 = vmul.f32 %v2190_v20, %v2428_v29  ;;  %v1200_v8 = vadd.f32 %v2430_v11, %v1129_v0  ;;  %v1201_v12 = vadd.f32 %v2430_v11, %v1130_v4  ;;  %v2746_v40 = vld [vmem:[#allocation26_spill] sm:$0xff] }
 0x290   : > { %1260 = vst [vmem:[#allocation14 + $0x60] sm:$0xff] %v1196_v5  ;;  %1261 = vst [vmem:[#allocation14 + $0x68] sm:$0xff] %v1197_v2  ;;  %v1202_v37 = vadd.f32 %v2430_v11, %v1131_v17  ;;  %v1203_v35 = vadd.f32 %v2430_v11, %v1132_v57  ;;  %v1204_v61 = vadd.f32 %v2430_v11, %v1133_v15  ;;  %v2747_v5 = vld [vmem:[#allocation28_spill] sm:$0xff] }
 0x291   : > { %1262 = vst [vmem:[#allocation14 + $0x70] sm:$0xff] %v1198_v6  ;;  %1263 = vst [vmem:[#allocation14 + $0x78] sm:$0xff] %v1199_v19  ;;  %v1205_v18 = vadd.f32 %v2430_v11, %v1134_v33  ;;  %v1206_v22 = vadd.f32 %v2430_v11, %v1135_v10  ;;  %v1207_v9 = vadd.f32 %v2430_v11, %v1136_v14  ;;  %v2749_v19 = vld [vmem:[#allocation27_spill] sm:$0xff] }
 0x292   : > { %1264 = vst [vmem:[#allocation14 + $0x80] sm:$0xff] %v1200_v8  ;;  %1265 = vst [vmem:[#allocation14 + $0x88] sm:$0xff] %v1201_v12  ;;  %v1137_v16 = vmul.f32 %v2428_v29, %v2202_v26  ;;  %v1138_v20 = vmul.f32 %v2428_v29, %v2210_v30  ;;  %v1139_v21 = vmul.f32 %v2198_v24, %v2428_v29  ;;  %v2750_v12 = vld [vmem:[#allocation30_spill] sm:$0xff] }
 0x293   : > { %1266 = vst [vmem:[#allocation14 + $0x90] sm:$0xff] %v1202_v37  ;;  %1267 = vst [vmem:[#allocation14 + $0x98] sm:$0xff] %v1203_v35  ;;  %v1140_v31 = vmul.f32 %v2206_v28, %v2428_v29  ;;  %v1141_v3 = vmul.f32 %v2428_v29, %v2218_v34  ;;  %v1142_v13 = vmul.f32 %v2428_v29, %v2226_v38  ;;  %v2751_v35 = vld [vmem:[#allocation32_spill] sm:$0xff] }
 0x294   : > { %1268 = vst [vmem:[#allocation14 + $0xa0] sm:$0xff] %v1204_v61  ;;  %1269 = vst [vmem:[#allocation14 + $0xa8] sm:$0xff] %v1205_v18  ;;  %v1143_v26 = vmul.f32 %v2214_v32, %v2428_v29  ;;  %v1144_v30 = vmul.f32 %v2222_v36, %v2428_v29  ;;  %v1208_v24 = vadd.f32 %v2430_v11, %v1137_v16  ;;  %v2752_v18 = vld [vmem:[#allocation29_spill] sm:$0xff] }
 0x295   : > { %1270 = vst [vmem:[#allocation14 + $0xb0] sm:$0xff] %v1206_v22  ;;  %1271 = vst [vmem:[#allocation14 + $0xb8] sm:$0xff] %v1207_v9  ;;  %v1209_v28 = vadd.f32 %v2430_v11, %v1138_v20  ;;  %v1210_v39 = vadd.f32 %v2430_v11, %v1139_v21  ;;  %v1211_v63 = vadd.f32 %v2430_v11, %v1140_v31  ;;  %v2753_v9 = vld [vmem:[#allocation31_spill] sm:$0xff]  ;;  %v2754_v20 = vld [vmem:[#allocation34_spill] sm:$0xff] }
 0x296   : > { %v1212_v44 = vadd.f32 %v2430_v11, %v1141_v3  ;;  %v1213_v34 = vadd.f32 %v2430_v11, %v1142_v13  ;;  %v1214_v38 = vadd.f32 %v2430_v11, %v1143_v26  ;;  %v1215_v42 = vadd.f32 %v2430_v11, %v1144_v30  ;;  %1272 = vst [vmem:[#allocation14 + $0xc0] sm:$0xff] %v1208_v24  ;;  %v2755_v31 = vld [vmem:[#allocation36_spill] sm:$0xff]  ;;  %v2756_v13 = vld [vmem:[#allocation33_spill] sm:$0xff]  ;;  %v2757_v30 = vld [vmem:[#allocation35_spill] sm:$0xff] }
 0x297   : > { %1273 = vst [vmem:[#allocation14 + $0xc8] sm:$0xff] %v1209_v28  ;;  %1274 = vst [vmem:[#allocation14 + $0xd0] sm:$0xff] %v1210_v39  ;;  %v1145_v32 = vmul.f32 %v2428_v29, %v2108_v43  ;;  %v1146_v36 = vmul.f32 %v2428_v29, %v2116_v47  ;;  %v1147_v50 = vmul.f32 %v2104_v41, %v2428_v29 }
 0x298   : > { %1275 = vst [vmem:[#allocation14 + $0xd8] sm:$0xff] %v1211_v63  ;;  %v1148_v54 = vmul.f32 %v2112_v45, %v2428_v29  ;;  %1276 = vst [vmem:[#allocation14 + $0xe0] sm:$0xff] %v1212_v44  ;;  %v1149_v7 = vmul.f32 %v2428_v29, %v2124_v51  ;;  %v1150_v48 = vmul.f32 %v2428_v29, %v2132_v55 }
 0x299   : > { %1277 = vst [vmem:[#allocation14 + $0xe8] sm:$0xff] %v1213_v34  ;;  %1278 = vst [vmem:[#allocation14 + $0xf0] sm:$0xff] %v1214_v38  ;;  %v1151_v43 = vmul.f32 %v2120_v49, %v2428_v29  ;;  %v1152_v47 = vmul.f32 %v2128_v53, %v2428_v29  ;;  %v1216_v41 = vadd.f32 %v2430_v11, %v1145_v32  ;;  %v2743_v53 = vld [vmem:[#allocation24_spill] sm:$0xff] }
 0x29a   : > { %1279 = vst [vmem:[#allocation14 + $0xf8] sm:$0xff] %v1215_v42  ;;  %v1217_v45 = vadd.f32 %v2430_v11, %v1146_v36  ;;  %v1218_v52 = vadd.f32 %v2430_v11, %v1147_v50  ;;  %v1219_v23 = vadd.f32 %v2430_v11, %v1148_v54  ;;  %v1220_v25 = vadd.f32 %v2430_v11, %v1149_v7  ;;  %v2758_v36 = vld [vmem:[#allocation38_spill] sm:$0xff]  ;;  %v2759_v54 = vld [vmem:[#allocation40_spill] sm:$0xff] }
 0x29b   : > { %v1221_v51 = vadd.f32 %v2430_v11, %v1150_v48  ;;  %v1222_v55 = vadd.f32 %v2430_v11, %v1151_v43  ;;  %v1223_v1 = vadd.f32 %v2430_v11, %v1152_v47  ;;  %1280 = vst [vmem:[#allocation14 + $0x100] sm:$0xff] %v1216_v41  ;;  %v1153_v49 = vmul.f32 %v2428_v29, %v2140_v59  ;;  %v2748_v59 = vld [vmem:[#allocation25_spill] sm:$0xff]  ;;  %v2761_v47 = vld [vmem:[#allocation39_spill] sm:$0xff] }
 0x29c   : > { %1281 = vst [vmem:[#allocation14 + $0x108] sm:$0xff] %v1217_v45  ;;  %1282 = vst [vmem:[#allocation14 + $0x110] sm:$0xff] %v1218_v52  ;;  %v1154_v46 = vmul.f32 %v2428_v29, %v2743_v53  ;;  %v1155_v62 = vmul.f32 %v2744_v58, %v2428_v29  ;;  %v1156_v60 = vmul.f32 %v2745_v56, %v2428_v29  ;;  %v2760_v48 = vld [vmem:[#allocation37_spill] sm:$0xff]  ;;  %v2762_v45 = vld [vmem:[#allocation42_spill] sm:$0xff] }
 0x29d   : > { %1283 = vst [vmem:[#allocation14 + $0x118] sm:$0xff] %v1219_v23  ;;  %1284 = vst [vmem:[#allocation14 + $0x120] sm:$0xff] %v1220_v25  ;;  %v1157_v27 = vmul.f32 %v2428_v29, %v2746_v40  ;;  %v1158_v2 = vmul.f32 %v2428_v29, %v2747_v5  ;;  %v1159_v6 = vmul.f32 %v2748_v59, %v2428_v29  ;;  %v2763_v23 = vld [vmem:[#allocation44_spill] sm:$0xff] }
 0x29e   : > { %1285 = vst [vmem:[#allocation14 + $0x128] sm:$0xff] %v1221_v51  ;;  %1286 = vst [vmem:[#allocation14 + $0x130] sm:$0xff] %v1222_v55  ;;  %v1160_v0 = vmul.f32 %v2749_v19, %v2428_v29  ;;  %v1224_v4 = vadd.f32 %v2430_v11, %v1153_v49  ;;  %v1225_v17 = vadd.f32 %v2430_v11, %v1154_v46  ;;  %v2764_v51 = vld [vmem:[#allocation41_spill] sm:$0xff] }
 0x29f   : > { %1287 = vst [vmem:[#allocation14 + $0x138] sm:$0xff] %v1223_v1  ;;  %v1226_v57 = vadd.f32 %v2430_v11, %v1155_v62  ;;  %v1227_v15 = vadd.f32 %v2430_v11, %v1156_v60  ;;  %v1228_v33 = vadd.f32 %v2430_v11, %v1157_v27  ;;  %v1229_v10 = vadd.f32 %v2430_v11, %v1158_v2  ;;  %v2765_v1 = vld [vmem:[#allocation43_spill] sm:$0xff] }
 0x2a0   : > { %v1230_v14 = vadd.f32 %v2430_v11, %v1159_v6  ;;  %v1231_v8 = vadd.f32 %v2430_v11, %v1160_v0  ;;  %1288 = vst [vmem:[#allocation14 + $0x140] sm:$0xff] %v1224_v4  ;;  %1289 = vst [vmem:[#allocation14 + $0x148] sm:$0xff] %v1225_v17  ;;  %v1161_v37 = vmul.f32 %v2428_v29, %v2750_v12 }
 0x2a1   : > { %1290 = vst [vmem:[#allocation14 + $0x150] sm:$0xff] %v1226_v57  ;;  %1291 = vst [vmem:[#allocation14 + $0x158] sm:$0xff] %v1227_v15  ;;  %v1162_v61 = vmul.f32 %v2428_v29, %v2751_v35  ;;  %v1163_v22 = vmul.f32 %v2752_v18, %v2428_v29  ;;  %v1164_v16 = vmul.f32 %v2753_v9, %v2428_v29 }
 0x2a2   : > { %1292 = vst [vmem:[#allocation14 + $0x160] sm:$0xff] %v1228_v33  ;;  %1293 = vst [vmem:[#allocation14 + $0x168] sm:$0xff] %v1229_v10  ;;  %v1165_v21 = vmul.f32 %v2428_v29, %v2754_v20  ;;  %v1166_v3 = vmul.f32 %v2428_v29, %v2755_v31  ;;  %v1167_v26 = vmul.f32 %v2756_v13, %v2428_v29 }
 0x2a3   : > { %1294 = vst [vmem:[#allocation14 + $0x170] sm:$0xff] %v1230_v14  ;;  %1295 = vst [vmem:[#allocation14 + $0x178] sm:$0xff] %v1231_v8  ;;  %v1168_v24 = vmul.f32 %v2757_v30, %v2428_v29  ;;  %v1232_v28 = vadd.f32 %v2430_v11, %v1161_v37  ;;  %v1233_v39 = vadd.f32 %v2430_v11, %v1162_v61 }
 0x2a4   : > { %v1234_v63 = vadd.f32 %v2430_v11, %v1163_v22  ;;  %v1235_v44 = vadd.f32 %v2430_v11, %v1164_v16  ;;  %v1236_v34 = vadd.f32 %v2430_v11, %v1165_v21  ;;  %v1237_v38 = vadd.f32 %v2430_v11, %v1166_v3 }
 0x2a5   : > { %v1238_v42 = vadd.f32 %v2430_v11, %v1167_v26  ;;  %v1239_v32 = vadd.f32 %v2430_v11, %v1168_v24  ;;  %1296 = vst [vmem:[#allocation14 + $0x180] sm:$0xff] %v1232_v28  ;;  %1297 = vst [vmem:[#allocation14 + $0x188] sm:$0xff] %v1233_v39  ;;  %v1169_v50 = vmul.f32 %v2428_v29, %v2758_v36 }
 0x2a6   : > { %1298 = vst [vmem:[#allocation14 + $0x190] sm:$0xff] %v1234_v63  ;;  %1299 = vst [vmem:[#allocation14 + $0x198] sm:$0xff] %v1235_v44  ;;  %v1170_v7 = vmul.f32 %v2428_v29, %v2759_v54  ;;  %v1171_v43 = vmul.f32 %v2760_v48, %v2428_v29  ;;  %v1172_v41 = vmul.f32 %v2761_v47, %v2428_v29 }
 0x2a7   : > { %1300 = vst [vmem:[#allocation14 + $0x1a0] sm:$0xff] %v1236_v34  ;;  %1301 = vst [vmem:[#allocation14 + $0x1a8] sm:$0xff] %v1237_v38  ;;  %v1173_v52 = vmul.f32 %v2428_v29, %v2762_v45  ;;  %v1174_v25 = vmul.f32 %v2428_v29, %v2763_v23  ;;  %v1175_v55 = vmul.f32 %v2764_v51, %v2428_v29 }
 0x2a8   : > { %1302 = vst [vmem:[#allocation14 + $0x1b0] sm:$0xff] %v1238_v42  ;;  %1303 = vst [vmem:[#allocation14 + $0x1b8] sm:$0xff] %v1239_v32  ;;  %v1176_v49 = vmul.f32 %v2765_v1, %v2428_v29  ;;  %v1240_v53 = vadd.f32 %v2430_v11, %v1169_v50  ;;  %v1241_v46 = vadd.f32 %v2430_v11, %v1170_v7 }
 0x2a9   : > { %v1242_v58 = vadd.f32 %v2430_v11, %v1171_v43  ;;  %v1243_v62 = vadd.f32 %v2430_v11, %v1172_v41  ;;  %v1244_v56 = vadd.f32 %v2430_v11, %v1173_v52  ;;  %v1245_v60 = vadd.f32 %v2430_v11, %v1174_v25 }
 0x2aa   : > { %v1246_v40 = vadd.f32 %v2430_v11, %v1175_v55  ;;  %v1247_v27 = vadd.f32 %v2430_v11, %v1176_v49  ;;  %1304 = vst [vmem:[#allocation14 + $0x1c0] sm:$0xff] %v1240_v53  ;;  %1305 = vst [vmem:[#allocation14 + $0x1c8] sm:$0xff] %v1241_v46 }
 0x2ab   : > { %1306 = vst [vmem:[#allocation14 + $0x1d0] sm:$0xff] %v1242_v58  ;;  %1307 = vst [vmem:[#allocation14 + $0x1d8] sm:$0xff] %v1243_v62 }
 0x2ac   : > { %1308 = vst [vmem:[#allocation14 + $0x1e0] sm:$0xff] %v1244_v56  ;;  %1309 = vst [vmem:[#allocation14 + $0x1e8] sm:$0xff] %v1245_v60 }
 0x2ad   : > { %1310 = vst [vmem:[#allocation14 + $0x1f0] sm:$0xff] %v1246_v40  ;;  %1311 = vst [vmem:[#allocation14 + $0x1f8] sm:$0xff] %v1247_v27 }
 0x2ae PF: > { %p2626_p9 = scmp.eq.s32.totalorder %s1428_s18, 1  ;;  %s1935_s20 = smov [#allocation14]  }
 0x2af   : > { %s1327_s21 = sshll.u32 %s1935_s20, 4  ;;  %s1328_s21 = int_to_ptr.vmem [resolvable:$true] %s1327_s21 }
 0x2b0   : > { %s1862_s24 = scalar_lea.vmem %s1328_s21, 8192  ;;  %s1868_s6 = scalar_lea.vmem %s1328_s21, 16384 }
 0x2b1   : > { %p1863_p10 = scmp.ne.s32.totalorder %s1328_s21, %s1862_s24  ;;  %p1869_p13 = scmp.lt.s32.totalorder %s1328_s21, %s1328_s21 }
 0x2b2   : > { %p1870_p0 = scmp.lt.s32.totalorder %s1868_s6, %s1862_s24 }
 0x2b3   : > { %p1864_p11 = pnand %p1863_p10, %p2626_p9 }
 0x2b4   : > { %p1871_p1 = por %p1870_p0, %p1869_p13 }
 0x2b5   : > { %p1865_p12 = pneg %p1864_p11 }
 0x2b7   : > { %p1872_p4 = pnand %p1871_p1, %p1865_p12 }
 0x2b9   : > { %1875 = shalt.err (!%p1872_p4)
}
 0x2ba   : > { %s1876_s11 = scalar_lea.hbm %s2664_s4, 8192 }
 0x2bb   : > { %p1877_p7 = scmp.ne.s32.totalorder %s2664_s4, %s1876_s11  ;;  %p1882_p5 = scmp.lt.u32.totalorder %s1876_s11, %s2664_s4 }
 0x2bd   : > { %p1878_p2 = pnand %p1877_p7, %p2626_p9 }
 0x2bf   : > { %p1879_p3 = pneg %p1878_p2 }
 0x2c1   : > { %p1884_p8 = pnand %p1882_p5, %p1879_p3 }
 0x2c3   : > { %1887 = shalt.err (!%p1884_p8)
}
 0x2c4   : > { %s1936_s13 = smov 128   ;;  %s1937_s14 = smov 8  }
 0x2c5   : > { %1643 = dma.vmem_to_hbm [thread:$0]  (%p2626_p9), %s1328_s21, 8192, %s2664_s4, [#allocation8], %s1936_s13, %s1936_s13, %s1937_s14  }
 0x2c6 PF: > { %p1672_p6 = scmp.ge.s32.totalorder %s1926_s17, 2  ;;  %p1673_p10 = scmp.eq.s32.totalorder %s1429_s19, 1 }
 0x2c8   : > { %p1660_p11 = pnand %p1673_p10, %p1672_p6 }
 0x2ca   : > { %1913 = dma.done.wait (!%p1660_p11), [#allocation8], 8192  }
 0x2cb   : > { %1915 = vsyncadd (!%p1660_p11), [#allocation8], 4294959104  ;;  %s20_s17 = sadd.s32 1, %s1926_s17   ;;  %s2767_s15 = smov %s1922_s16 }
 0x2cc   : > { %p17_p12 = scmp.ge.s32.totalorder %s20_s17, 4   ;;  %s2768_s16 = smov %s2770_s25 }
 0x2ce   :  { %19 = sbr.rel (!%p17_p12) target bundleno = 6 (0x6), region = 102 }
 0x2d5   :  { %1348 = vsyncpa [#allocation7], 1 }
 0x2d6   :  { %1350 = vsyncpa [#allocation7 + $0x1], 1 }
 0x2d7   :  { %1351 = vsyncpa [#allocation10], 1 }
 0x2d8   :  { %1352 = vsyncpa [#allocation13], 1 }
 0x2d9   :  { %1353 = vsyncpa [#allocation8], 1 }
 0x2da   :  { %1355 = vsyncpa [#allocation8 + $0x1], 1 }

</bundles_post_ra>
